<compile_context>
chip_gen: v7x
topology: tpu7x:2x2x1
jax: 0.10.0
libtpu: 0.0.40
codegen_flags: <defaults>
</compile_context>

<pallas_src>
import math
import jax
import jax.numpy as jnp
from jax import lax
from jax.experimental import pallas as pl
from jax.experimental.pallas import tpu as pltpu


def _round_up(x: int, m: int) -> int:
    return ((x + m - 1) // m) * m


def _lora_linear_kernel(x_ref, w_ref, a_ref, b_ref, bias_ref, o_ref,
                        acc_ref, u_ref):
    """One (i, j, k) grid step of  y = x @ W^T + (x @ A^T) @ B^T + bias.

    x_ref   : (TM, TK)   input tile
    w_ref   : (TN, TK)   W tile (PyTorch (out, in) layout)
    a_ref   : (R,  TK)   K-slice of lora_A (rank padded to R)
    b_ref   : (TN, R)    N-slice of lora_B
    bias_ref: (1,  TN)
    o_ref   : (TM, TN)
    acc_ref : (TM, TN) f32 scratch -- main GEMM accumulator (per (i, j))
    u_ref   : (TM, R)  f32 scratch -- x @ A^T, accumulated only at j == 0 and
              reused for all other j of the same i (scratch persists across
              grid steps).
    """
    j = pl.program_id(1)
    k = pl.program_id(2)

    @pl.when(k == 0)
    def _():
        acc_ref[...] = jnp.zeros_like(acc_ref)

    x = x_ref[...]
    # Main GEMM: contract the shared in_features axis directly (no transpose).
    acc_ref[...] += lax.dot_general(
        x, w_ref[...],
        dimension_numbers=(((1,), (1,)), ((), ())),
        preferred_element_type=jnp.float32)

    # Low-rank projection u = x @ A^T is independent of j: compute it only for
    # the first output-column tile and carry it for the remaining j tiles.
    @pl.when((j == 0) & (k == 0))
    def _():
        u_ref[...] = jnp.zeros_like(u_ref)

    @pl.when(j == 0)
    def _():
        u_ref[...] += lax.dot_general(
            x, a_ref[...],
            dimension_numbers=(((1,), (1,)), ((), ())),
            preferred_element_type=jnp.float32)

    # Epilogue on the last K step: add the low-rank term and the bias.
    @pl.when(k == pl.num_programs(2) - 1)
    def _():
        lora = lax.dot_general(
            u_ref[...], b_ref[...].astype(jnp.float32),
            dimension_numbers=(((1,), (1,)), ((), ())),
            preferred_element_type=jnp.float32)
        y = acc_ref[...] + lora + bias_ref[...].astype(jnp.float32)
        o_ref[...] = y.astype(o_ref.dtype)


def linear_lora_forward(x, w, bias, lora_a, lora_b, *,
                        tm: int = 256, tn: int = 512, tk: int = 512):
    """LinearLoRA.forward:  x @ (W + lora_B @ lora_A)^T + bias.

    x: (batch, seq, in_f);  w: (out_f, in_f);  bias: (out_f,)
    lora_a: (rank, in_f);   lora_b: (out_f, rank)
    Returns (batch, seq, out_f) in x.dtype.
    """
    batch, seq, in_f = x.shape
    out_f = w.shape[0]
    rank = lora_a.shape[0]
    m = batch * seq

    # Clamp tile sizes to the padded problem dims (keeps small shapes legal).
    tm = min(tm, _round_up(m, 8))
    tn = min(tn, _round_up(out_f, 128))
    tk = min(tk, _round_up(in_f, 128))

    mp = _round_up(m, tm)
    np_ = _round_up(out_f, tn)
    kp = _round_up(in_f, tk)
    r_pad = _round_up(rank, 8)       # pad rank to a full sublane group

    dt = x.dtype
    # Zero-padding is safe: padded K columns of x meet zero W/A columns,
    # padded N rows of W/B/bias produce zero output columns (sliced off),
    # padded M rows are sliced off.
    x2d = jnp.zeros((mp, kp), dt).at[:m, :in_f].set(x.reshape(m, in_f))
    w_p = jnp.zeros((np_, kp), w.dtype).at[:out_f, :in_f].set(w)
    a_p = jnp.zeros((r_pad, kp), lora_a.dtype).at[:rank, :in_f].set(lora_a)
    b_p = jnp.zeros((np_, r_pad), lora_b.dtype).at[:out_f, :rank].set(lora_b)
    bias_p = jnp.zeros((1, np_), bias.dtype).at[0, :out_f].set(bias)

    grid = (mp // tm, np_ // tn, kp // tk)

    itemsize = jnp.dtype(dt).itemsize
    flops = (2 * mp * kp * np_            # main GEMM
             + 2 * mp * kp * r_pad        # u = x @ A^T (computed once per i)
             + 2 * mp * r_pad * np_)      # u @ B^T epilogue
    bytes_accessed = ((mp * kp + np_ * kp + mp * np_) * itemsize
                      + (r_pad * kp + np_ * r_pad + np_) * itemsize)

    out2d = pl.pallas_call(
        _lora_linear_kernel,
        out_shape=jax.ShapeDtypeStruct((mp, np_), dt),
        grid_spec=pltpu.PrefetchScalarGridSpec(
            num_scalar_prefetch=0,
            grid=grid,
            in_specs=[
                pl.BlockSpec((tm, tk), lambda i, j, k: (i, k)),     # x
                pl.BlockSpec((tn, tk), lambda i, j, k: (j, k)),     # W
                pl.BlockSpec((r_pad, tk), lambda i, j, k: (0, k)),  # lora_A
                pl.BlockSpec((tn, r_pad), lambda i, j, k: (j, 0)),  # lora_B
                pl.BlockSpec((1, tn), lambda i, j, k: (0, j)),      # bias
            ],
            out_specs=pl.BlockSpec((tm, tn), lambda i, j, k: (i, j)),
            scratch_shapes=[
                pltpu.VMEM((tm, tn), jnp.float32),     # GEMM accumulator
                pltpu.VMEM((tm, r_pad), jnp.float32),  # x @ A^T carry over j
            ]),
        # Only the M axis is "parallel": the u carry across j requires that,
        # for a given i, the j == 0 tile runs first and on the same core as
        # the other j tiles.  k is the sequential reduction axis.
        compiler_params=pltpu.CompilerParams(
            dimension_semantics=("parallel", "arbitrary", "arbitrary")),
        cost_estimate=pl.CostEstimate(
            flops=flops, transcendentals=0, bytes_accessed=bytes_accessed),
    )(x2d, w_p, a_p, b_p, bias_p)

    return out2d[:m, :out_f].reshape(batch, seq, out_f)


def _ref_forward(x, w, bias, lora_a, lora_b):
    # Pure-JAX reference (same math as the PyTorch forward).
    w_eff = w + lora_b @ lora_a
    return jnp.einsum("bsi,oi->bso", x, w_eff) + bias


if __name__ == "__main__":
    key = jax.random.PRNGKey(0)
    k_x, k_w, k_bias, k_a, k_b = jax.random.split(key, 5)

    # --- Small single-tile case (module defaults: rank=5) ---
    batch, seq = 2, 8
    in_features, out_features, rank = 32, 32, 5

    x = jax.random.normal(k_x, (batch, seq, in_features), dtype=jnp.float32)

    # nn.Linear default init: kaiming_uniform_(a=sqrt(5)) -> U(-1/sqrt(in), 1/sqrt(in))
    w_bound = 1.0 / math.sqrt(in_features)
    w = jax.random.uniform(k_w, (out_features, in_features),
                           minval=-w_bound, maxval=w_bound, dtype=jnp.float32)
    bias = jax.random.uniform(k_bias, (out_features,),
                              minval=-w_bound, maxval=w_bound, dtype=jnp.float32)
    lora_a = jax.random.uniform(k_a, (rank, in_features),
                                minval=-w_bound, maxval=w_bound, dtype=jnp.float32)
    # Module init zeros lora_B; use small nonzero values here so the LoRA
    # branch actually contributes in this synthetic test (deterministic).
    lora_b = 0.01 * jax.random.normal(k_b, (out_features, rank), dtype=jnp.float32)

    out = jax.block_until_ready(linear_lora_forward(x, w, bias, lora_a, lora_b))
    ref = _ref_forward(x, w, bias, lora_a, lora_b)
    assert out.shape == (batch, seq, out_features)
    assert jnp.allclose(out, ref, atol=1e-4, rtol=1e-4), \
        float(jnp.max(jnp.abs(out - ref)))

    # --- Multi-tile case: exercises reuse of the u = x @ A^T carry for j > 0 ---
    b2, s2, in2, out2, r2 = 2, 64, 256, 384, 5
    kx2, kw2, kb2, ka2, kB2 = jax.random.split(jax.random.PRNGKey(1), 5)
    x2 = jax.random.normal(kx2, (b2, s2, in2), dtype=jnp.float32)
    w2 = jax.random.normal(kw2, (out2, in2), dtype=jnp.float32) / math.sqrt(in2)
    bias2 = jax.random.normal(kb2, (out2,), dtype=jnp.float32)
    la2 = jax.random.normal(ka2, (r2, in2), dtype=jnp.float32) / math.sqrt(in2)
    lb2 = 0.01 * jax.random.normal(kB2, (out2, r2), dtype=jnp.float32)

    out2_ = jax.block_until_ready(
        linear_lora_forward(x2, w2, bias2, la2, lb2, tm=64, tn=128, tk=128))
    ref2 = _ref_forward(x2, w2, bias2, la2, lb2)
    assert jnp.allclose(out2_, ref2, atol=1e-3, rtol=1e-3), \
        float(jnp.max(jnp.abs(out2_ - ref2)))

    print("KERNEL_OK")
</pallas_src>

<mosaic_0001>
module attributes {stable_mosaic.version = 11 : i64} {
  func.func @_lora_linear_kernel(%arg0: i32, %arg1: i32, %arg2: i32, %arg3: memref<16x128xf32, #tpu.memory_space<vmem>>, %arg4: memref<128x128xf32, #tpu.memory_space<vmem>>, %arg5: memref<8x128xf32, #tpu.memory_space<vmem>>, %arg6: memref<128x8xf32, #tpu.memory_space<vmem>>, %arg7: memref<1x128xf32, #tpu.memory_space<vmem>>, %arg8: memref<16x128xf32, #tpu.memory_space<vmem>>, %arg9: memref<16x128xf32, #tpu.memory_space<vmem>>, %arg10: memref<16x8xf32, #tpu.memory_space<vmem>>) attributes {dimension_semantics = [#tpu.dimension_semantics<parallel>, #tpu.dimension_semantics<arbitrary>, #tpu.dimension_semantics<arbitrary>], iteration_bounds = array<i64: 1, 1, 1>, scalar_prefetch = 0 : i64, scratch_operands = 2 : i64, tpu.core_type = #tpu.core_type<tc>, window_params = [{transform_indices = @transform_0, window_bounds = array<i64: 16, 128>}, {transform_indices = @transform_1, window_bounds = array<i64: 128, 128>}, {transform_indices = @transform_2, window_bounds = array<i64: 8, 128>}, {transform_indices = @transform_3, window_bounds = array<i64: 128, 8>}, {transform_indices = @transform_4, window_bounds = array<i64: 1, 128>}, {transform_indices = @transform_5, window_bounds = array<i64: 16, 128>}]} {
    %c0_i32 = arith.constant 0 : i32
    %0 = arith.cmpi eq, %arg2, %c0_i32 : i32
    %1 = arith.extui %0 : i1 to i32
    %c0_i32_0 = arith.constant 0 : i32
    %2 = arith.cmpi ne, %1, %c0_i32_0 : i32
    scf.if %2 {
      %cst_15 = arith.constant 0.000000e+00 : f32
      %20 = vector.broadcast %cst_15 : f32 to vector<16x128xf32>
      %c0_16 = arith.constant 0 : index
      %c0_17 = arith.constant 0 : index
      %21 = vector.load %arg9[%c0_16, %c0_17] : memref<16x128xf32, #tpu.memory_space<vmem>>, vector<16x128xf32>
      tpu.vector_store %arg9[%c0_16, %c0_17], %20 {strides = array<i32>} : memref<16x128xf32, #tpu.memory_space<vmem>>, vector<16x128xf32>,
    } else {
    }
    %c0 = arith.constant 0 : index
    %c0_1 = arith.constant 0 : index
    %3 = vector.load %arg3[%c0, %c0_1] : memref<16x128xf32, #tpu.memory_space<vmem>>, vector<16x128xf32>
    %c0_2 = arith.constant 0 : index
    %c0_3 = arith.constant 0 : index
    %4 = vector.load %arg9[%c0_2, %c0_3] : memref<16x128xf32, #tpu.memory_space<vmem>>, vector<16x128xf32>
    %c0_4 = arith.constant 0 : index
    %c0_5 = arith.constant 0 : index
    %5 = vector.load %arg4[%c0_4, %c0_5] : memref<128x128xf32, #tpu.memory_space<vmem>>, vector<128x128xf32>
    %cst = arith.constant dense<0.000000e+00> : vector<16x128xf32>
    %6 = tpu.matmul %3, %5, %cst {dimension_numbers = #tpu.dot_dimension_numbers<[1], [1], [0], [0], [0, 0, 1, 0], [], []>} : vector<16x128xf32>, vector<128x128xf32>, vector<16x128xf32> -> vector<16x128xf32>
    %7 = arith.addf %4, %6 : vector<16x128xf32>
    %c0_6 = arith.constant 0 : index
    %c0_7 = arith.constant 0 : index
    %8 = vector.load %arg9[%c0_6, %c0_7] : memref<16x128xf32, #tpu.memory_space<vmem>>, vector<16x128xf32>
    tpu.vector_store %arg9[%c0_6, %c0_7], %7 {strides = array<i32>} : memref<16x128xf32, #tpu.memory_space<vmem>>, vector<16x128xf32>,
    %c0_i32_8 = arith.constant 0 : i32
    %9 = arith.cmpi eq, %arg1, %c0_i32_8 : i32
    %c0_i32_9 = arith.constant 0 : i32
    %10 = arith.cmpi eq, %arg2, %c0_i32_9 : i32
    %11 = arith.andi %9, %10 : i1
    %12 = arith.extui %11 : i1 to i32
    %c0_i32_10 = arith.constant 0 : i32
    %13 = arith.cmpi ne, %12, %c0_i32_10 : i32
    scf.if %13 {
      %cst_15 = arith.constant 0.000000e+00 : f32
      %20 = vector.broadcast %cst_15 : f32 to vector<16x8xf32>
      %c0_16 = arith.constant 0 : index
      %c0_17 = arith.constant 0 : index
      %21 = vector.load %arg10[%c0_16, %c0_17] : memref<16x8xf32, #tpu.memory_space<vmem>>, vector<16x8xf32>
      tpu.vector_store %arg10[%c0_16, %c0_17], %20 {strides = array<i32>} : memref<16x8xf32, #tpu.memory_space<vmem>>, vector<16x8xf32>,
    } else {
    }
    %c0_i32_11 = arith.constant 0 : i32
    %14 = arith.cmpi eq, %arg1, %c0_i32_11 : i32
    %15 = arith.extui %14 : i1 to i32
    %c0_i32_12 = arith.constant 0 : i32
    %16 = arith.cmpi ne, %15, %c0_i32_12 : i32
    scf.if %16 {
      %c0_15 = arith.constant 0 : index
      %c0_16 = arith.constant 0 : index
      %20 = vector.load %arg10[%c0_15, %c0_16] : memref<16x8xf32, #tpu.memory_space<vmem>>, vector<16x8xf32>
      %c0_17 = arith.constant 0 : index
      %c0_18 = arith.constant 0 : index
      %21 = vector.load %arg5[%c0_17, %c0_18] : memref<8x128xf32, #tpu.memory_space<vmem>>, vector<8x128xf32>
      %cst_19 = arith.constant dense<0.000000e+00> : vector<16x8xf32>
      %22 = tpu.matmul %3, %21, %cst_19 {dimension_numbers = #tpu.dot_dimension_numbers<[1], [1], [0], [0], [0, 0, 1, 0], [], []>} : vector<16x128xf32>, vector<8x128xf32>, vector<16x8xf32> -> vector<16x8xf32>
      %23 = arith.addf %20, %22 : vector<16x8xf32>
      %c0_20 = arith.constant 0 : index
      %c0_21 = arith.constant 0 : index
      %24 = vector.load %arg10[%c0_20, %c0_21] : memref<16x8xf32, #tpu.memory_space<vmem>>, vector<16x8xf32>
      tpu.vector_store %arg10[%c0_20, %c0_21], %23 {strides = array<i32>} : memref<16x8xf32, #tpu.memory_space<vmem>>, vector<16x8xf32>,
    } else {
    }
    %c0_i32_13 = arith.constant 0 : i32
    %17 = arith.cmpi eq, %arg2, %c0_i32_13 : i32
    %18 = arith.extui %17 : i1 to i32
    %c0_i32_14 = arith.constant 0 : i32
    %19 = arith.cmpi ne, %18, %c0_i32_14 : i32
    scf.if %19 {
      %c0_15 = arith.constant 0 : index
      %c0_16 = arith.constant 0 : index
      %20 = vector.load %arg10[%c0_15, %c0_16] : memref<16x8xf32, #tpu.memory_space<vmem>>, vector<16x8xf32>
      %c0_17 = arith.constant 0 : index
      %c0_18 = arith.constant 0 : index
      %21 = vector.load %arg6[%c0_17, %c0_18] : memref<128x8xf32, #tpu.memory_space<vmem>>, vector<128x8xf32>
      %cst_19 = arith.constant dense<0.000000e+00> : vector<16x128xf32>
      %22 = tpu.matmul %20, %21, %cst_19 {dimension_numbers = #tpu.dot_dimension_numbers<[1], [1], [0], [0], [0, 0, 1, 0], [], []>} : vector<16x8xf32>, vector<128x8xf32>, vector<16x128xf32> -> vector<16x128xf32>
      %c0_20 = arith.constant 0 : index
      %c0_21 = arith.constant 0 : index
      %23 = vector.load %arg9[%c0_20, %c0_21] : memref<16x128xf32, #tpu.memory_space<vmem>>, vector<16x128xf32>
      %24 = arith.addf %23, %22 : vector<16x128xf32>
      %c0_22 = arith.constant 0 : index
      %c0_23 = arith.constant 0 : index
      %25 = vector.load %arg7[%c0_22, %c0_23] : memref<1x128xf32, #tpu.memory_space<vmem>>, vector<1x128xf32>
      %26 = vector.broadcast %25 : vector<1x128xf32> to vector<16x128xf32>
      %27 = arith.addf %24, %26 : vector<16x128xf32>
      %c0_24 = arith.constant 0 : index
      %c0_25 = arith.constant 0 : index
      %28 = vector.load %arg8[%c0_24, %c0_25] : memref<16x128xf32, #tpu.memory_space<vmem>>, vector<16x128xf32>
      tpu.vector_store %arg8[%c0_24, %c0_25], %27 {strides = array<i32>} : memref<16x128xf32, #tpu.memory_space<vmem>>, vector<16x128xf32>,
    } else {
    }
    return
  }
  func.func @transform_0(%arg0: i32, %arg1: i32, %arg2: i32) -> (i32, i32) {
    %c0_i32 = arith.constant 0 : i32
    return %arg0, %arg2 : i32, i32
  }
  func.func @transform_1(%arg0: i32, %arg1: i32, %arg2: i32) -> (i32, i32) {
    %c0_i32 = arith.constant 0 : i32
    return %arg1, %arg2 : i32, i32
  }
  func.func @transform_2(%arg0: i32, %arg1: i32, %arg2: i32) -> (i32, i32) {
    %c0_i32 = arith.constant 0 : i32
    %c0_i32_0 = arith.constant 0 : i32
    return %c0_i32, %arg2 : i32, i32
  }
  func.func @transform_3(%arg0: i32, %arg1: i32, %arg2: i32) -> (i32, i32) {
    %c0_i32 = arith.constant 0 : i32
    %c0_i32_0 = arith.constant 0 : i32
    return %arg1, %c0_i32 : i32, i32
  }
  func.func @transform_4(%arg0: i32, %arg1: i32, %arg2: i32) -> (i32, i32) {
    %c0_i32 = arith.constant 0 : i32
    %c0_i32_0 = arith.constant 0 : i32
    return %c0_i32, %arg1 : i32, i32
  }
  func.func @transform_5(%arg0: i32, %arg1: i32, %arg2: i32) -> (i32, i32) {
    %c0_i32 = arith.constant 0 : i32
    return %arg0, %arg1 : i32, i32
  }
}

</mosaic_0001>

<bundles_post_ra>
// kernel: tpu_custom_call.1
= control target key start
LH: loop header
LB: loop body
LE: loop exit
PB: predicated region body
PF: predicated region fallthrough
CT: control target
= control target key end

     0   :  { %10 = vsyncpa [#allocation5], 0  ;;  %s900_s0 = inlined_call_operand.hbm [shape: f32[16,128], index: 0, kind: input, shape index: {}]   ;;  %s901_s1 = inlined_call_operand.vmem [shape: f32[128,128], index: 1, kind: input, shape index: {}]   ;;  %s902_s2 = inlined_call_operand.vmem [shape: f32[8,128], index: 2, kind: input, shape index: {}]   ;;  %s903_s3 = inlined_call_operand.vmem [shape: f32[128,8], index: 3, kind: input, shape index: {}]   ;;  %s904_s4 = inlined_call_operand.vmem [shape: f32[1,128], index: 4, kind: input, shape index: {}]   ;;  %s905_s5 = inlined_call_operand.hbm [shape: f32[16,128], index: 5, kind: output, shape index: {}]  }
   0x1   :  { %11 = vsyncpa [#allocation6], 0  ;;  %s685_s18 = smov [#allocation4]   ;;  %s637_s22 = scalar_lea.hbm %s900_s0, 256 }
   0x2   :  { %s17_s19 = sshll.u32 %s685_s18, 4  ;;  %p638_p0 = scmp.ne.s32.totalorder %s900_s0, %s637_s22  ;;  %s18_s19 = int_to_ptr.vmem [resolvable:$true] %s17_s19 }
   0x3   :  { %p641_p1 = scmp.lt.u32.totalorder %s637_s22, %s900_s0 }
   0x5   :  { %p643_p2 = pnand %p641_p1, %p638_p0 }
   0x7   :  { %646 = shalt.err (!%p643_p2)
}
   0x8   :  { %s647_s27 = scalar_lea.vmem %s18_s19, 256  ;;  %p652_p4 = scmp.lt.s32.totalorder %s18_s19, %s18_s19 }
   0x9   :  { %p648_p3 = scmp.ne.s32.totalorder %s18_s19, %s647_s27  ;;  %p653_p5 = scmp.lt.s32.totalorder %s647_s27, %s647_s27 }
   0xb   :  { %p654_p6 = por %p653_p5, %p652_p4 }
   0xd   :  { %p655_p7 = pnand %p654_p6, %p648_p3 }
   0xf   :  { %658 = shalt.err (!%p655_p7)
}
  0x10   :  { %s686_s28 = smov 128   ;;  %s687_s29 = smov 8  }
  0x11   :  { %23 = dma.hbm_to_vmem [thread:$0]  %s900_s0, 256, %s18_s19, [#allocation5], %s686_s28, %s686_s28, %s687_s29  }
  0x12   :  { %681 = dma.done.wait [#allocation5], 256  }
  0x13   :  { %682 = vsyncadd [#allocation5], 4294967040  ;;  %v45_v0 = vld [vmem:[%s901_s1] sm:$0xff]  ;;  %v46_v1 = vld [vmem:[%s901_s1 + $0x8] sm:$0xff]  ;;  %vm145_vm0 = vcmask 64512   ;;  %v688_v46 = vmov 0.0  }
  0x14   :  { %v47_v2 = vld [vmem:[%s901_s1 + $0x10] sm:$0xff]  ;;  %v550_v3 = vpack.c.bf16 %v46_v1, %v45_v0  ;;  %v48_v4 = vld [vmem:[%s901_s1 + $0x18] sm:$0xff]  ;;  %v49_v6 = vld [vmem:[%s901_s1 + $0x20] sm:$0xff]  ;;  %147 = vst.msk [vmem:[#allocation3 + $0x8] sm:$0xff] %vm145_vm0, %v688_v46  ;;  %s689_s23 = smov [#allocation7]  }
  0x15   :  { %v554_v5 = vpack.c.bf16 %v48_v4, %v47_v2  ;;  %v750_v7 = vld [vmem:[#allocation4] sm:$0xff]  ;;  %vm754_vm1 = vmpackc.low %vm145_vm0, %vm145_vm0  ;;  %v50_v9 = vld [vmem:[%s901_s1 + $0x28] sm:$0xff]  ;;  %146 = vst.msk [vmem:[#allocation3] sm:$0xff] %vm145_vm0, %v688_v46  ;;  %s405_s24 = sshll.u32 %s689_s23, 4  ;;  %s406_s24 = int_to_ptr.vmem [resolvable:$true] %s405_s24 }
  0x16   :  { %551 = vmatprep.subr.bf16.mxu1 %v550_v3  ;;  %507 = vmatprep.mubr.f32.mxu1 %v750_v7  ;;  %v239_v10 = vld [vmem:[%s903_s3] sm:$0xff]  ;;  %v240_v11 = vld [vmem:[%s903_s3 + $0x8] sm:$0xff]  ;;  %v241_v13 = vld [vmem:[%s903_s3 + $0x10] sm:$0xff]  ;;  %v558_v16 = vpack.c.bf16 %v50_v9, %v49_v6  ;;  %s659_s25 = scalar_lea.vmem %s406_s24, 256  ;;  %p664_p9 = scmp.lt.s32.totalorder %s406_s24, %s406_s24 }
  0x17   :  { %553 = vmatpush3.bf16.xpose.msra.mxu1 %v550_v3  ;;  %v582_v12 = vpack.c.bf16 %v240_v11, %v239_v10  ;;  %v242_v14 = vld [vmem:[%s903_s3 + $0x18] sm:$0xff]  ;;  %v243_v17 = vld [vmem:[%s903_s3 + $0x20] sm:$0xff]  ;;  %v244_v18 = vld [vmem:[%s903_s3 + $0x28] sm:$0xff]  ;;  %p660_p8 = scmp.ne.s32.totalorder %s406_s24, %s659_s25  ;;  %p665_p10 = scmp.lt.s32.totalorder %s659_s25, %s659_s25 }
  0x18   :  { %555 = vmatprep.subr.bf16.mxu1 %v554_v5  ;;  %v588_v15 = vpack.c.bf16 %v242_v14, %v241_v13  ;;  %v51_v19 = vld [vmem:[%s901_s1 + $0x30] sm:$0xff]  ;;  %v52_v20 = vld [vmem:[%s901_s1 + $0x38] sm:$0xff]  ;;  %v594_v21 = vpack.c.bf16 %v244_v18, %v243_v17  ;;  %v53_v25 = vld [vmem:[%s901_s1 + $0x40] sm:$0xff] }
  0x19   :  { %584 = vmatprep.subr.msk.bf16.mxu0 %vm754_vm1, %v582_v12  ;;  %v562_v22 = vpack.c.bf16 %v52_v20, %v51_v19  ;;  %v245_v23 = vld [vmem:[%s903_s3 + $0x30] sm:$0xff]  ;;  %v246_v24 = vld [vmem:[%s903_s3 + $0x38] sm:$0xff]  ;;  %v54_v26 = vld [vmem:[%s901_s1 + $0x48] sm:$0xff]  ;;  %p666_p11 = por %p665_p10, %p664_p9 }
  0x1a   :  { %587 = vmatpush3.bf16.xpose.msk.msra.mxu0 %vm754_vm1, %v582_v12  ;;  %v600_v27 = vpack.c.bf16 %v246_v24, %v245_v23  ;;  %v566_v28 = vpack.c.bf16 %v54_v26, %v53_v25  ;;  %v247_v29 = vld [vmem:[%s903_s3 + $0x40] sm:$0xff]  ;;  %v248_v30 = vld [vmem:[%s903_s3 + $0x48] sm:$0xff]  ;;  %v55_v31 = vld [vmem:[%s901_s1 + $0x50] sm:$0xff] }
  0x1b   :  { %590 = vmatprep.subr.msk.bf16.mxu0 %vm754_vm1, %v588_v15  ;;  %v56_v32 = vld [vmem:[%s901_s1 + $0x58] sm:$0xff]  ;;  %v606_v33 = vpack.c.bf16 %v248_v30, %v247_v29  ;;  %v249_v35 = vld [vmem:[%s903_s3 + $0x50] sm:$0xff]  ;;  %v57_v37 = vld [vmem:[%s901_s1 + $0x60] sm:$0xff]  ;;  %p667_p12 = pnand %p666_p11, %p660_p8 }
  0x1c   :  { %v570_v34 = vpack.c.bf16 %v56_v32, %v55_v31  ;;  %v250_v36 = vld [vmem:[%s903_s3 + $0x58] sm:$0xff]  ;;  %v58_v38 = vld [vmem:[%s901_s1 + $0x68] sm:$0xff]  ;;  %v59_v41 = vld [vmem:[%s901_s1 + $0x70] sm:$0xff] }
  0x1d   :  { %v612_v39 = vpack.c.bf16 %v250_v36, %v249_v35  ;;  %v574_v40 = vpack.c.bf16 %v58_v38, %v57_v37  ;;  %v60_v42 = vld [vmem:[%s901_s1 + $0x78] sm:$0xff]  ;;  %v153_v44 = vld [vmem:[%s902_s2] sm:$0xff]  ;;  %v252_v48 = vld [vmem:[%s903_s3 + $0x68] sm:$0xff] }
  0x1e   :  { %v578_v43 = vpack.c.bf16 %v60_v42, %v59_v41  ;;  %v42_v45 = vld [vmem:[#allocation4 + $0x8] sm:$0xff]  ;;  %v251_v47 = vld [vmem:[%s903_s3 + $0x60] sm:$0xff]  ;;  %v253_v50 = vld [vmem:[%s903_s3 + $0x70] sm:$0xff] }
  0x1f   :  { %557 = vmatpush3.bf16.xpose.msra.mxu1 %v554_v5  ;;  %v618_v49 = vpack.c.bf16 %v252_v48, %v251_v47  ;;  %v254_v51 = vld [vmem:[%s903_s3 + $0x78] sm:$0xff]  ;;  %v152_v55 = vld [vmem:[#allocation3 + $0x8] sm:$0xff]  ;;  %v151_v56 = vld [vmem:[#allocation3] sm:$0xff] }
  0x20   :  { %559 = vmatprep.subr.bf16.mxu1 %v558_v16  ;;  %v624_v52 = vpack.c.bf16 %v254_v51, %v253_v50  ;;  %v435_v0 = vld [vmem:[%s904_s4] ss:$0 sm:$0xff] }
  0x22   :  { %593 = vmatpush3.bf16.xpose.msk.msra.mxu0 %vm754_vm1, %v588_v15 }
  0x23   :  { %596 = vmatprep.subr.msk.bf16.mxu0 %vm754_vm1, %v594_v21 }
  0x27   :  { %561 = vmatpush3.bf16.xpose.msra.mxu1 %v558_v16 }
  0x28   :  { %563 = vmatprep.subr.bf16.mxu1 %v562_v22 }
  0x2a   :  { %599 = vmatpush3.bf16.xpose.msk.msra.mxu0 %vm754_vm1, %v594_v21 }
  0x2b   :  { %602 = vmatprep.subr.msk.bf16.mxu0 %vm754_vm1, %v600_v27 }
  0x2f   :  { %565 = vmatpush3.bf16.xpose.msra.mxu1 %v562_v22 }
  0x30   :  { %567 = vmatprep.subr.bf16.mxu1 %v566_v28 }
  0x32   :  { %605 = vmatpush3.bf16.xpose.msk.msra.mxu0 %vm754_vm1, %v600_v27 }
  0x33   :  { %608 = vmatprep.subr.msk.bf16.mxu0 %vm754_vm1, %v606_v33 }
  0x37   :  { %569 = vmatpush3.bf16.xpose.msra.mxu1 %v566_v28 }
  0x38   :  { %571 = vmatprep.subr.bf16.mxu1 %v570_v34 }
  0x3a   :  { %611 = vmatpush3.bf16.xpose.msk.msra.mxu0 %vm754_vm1, %v606_v33 }
  0x3b   :  { %614 = vmatprep.subr.msk.bf16.mxu0 %vm754_vm1, %v612_v39 }
  0x3f   :  { %573 = vmatpush3.bf16.xpose.msra.mxu1 %v570_v34 }
  0x40   :  { %575 = vmatprep.subr.bf16.mxu1 %v574_v40 }
  0x42   :  { %617 = vmatpush3.bf16.xpose.msk.msra.mxu0 %vm754_vm1, %v612_v39 }
  0x43   :  { %620 = vmatprep.subr.msk.bf16.mxu0 %vm754_vm1, %v618_v49 }
  0x47   :  { %577 = vmatpush3.bf16.xpose.msra.mxu1 %v574_v40 }
  0x48   :  { %579 = vmatprep.subr.bf16.mxu1 %v578_v43 }
  0x4a   :  { %623 = vmatpush3.bf16.xpose.msk.msra.mxu0 %vm754_vm1, %v618_v49 }
  0x4b   :  { %626 = vmatprep.subr.msk.bf16.mxu0 %vm754_vm1, %v624_v52 }
  0x4f   :  { %581 = vmatpush3.bf16.xpose.msra.mxu1 %v578_v43 }
  0x50   :  { %510 = vmatprep.subr.mxu1 %v153_v44 }
  0x52   :  { %629 = vmatpush3.bf16.xpose.msk.msra.mxu0 %vm754_vm1, %v624_v52 }
  0x56   :  { %508 = vmatmul.mubr.f32.vlgmr.msra.gmra.mrb[0].mxu1 %v42_v45 }
  0x57   :  { %511 = vmatpush3.xpose.msra.mxu1 %v153_v44  ;;  %512 = vmatprep.mubr.f32.mxu1 %v750_v7 }
  0x5a   :  { %513 = vmatmul.mubr.f32.vlgmr.msra.gmra.mrb[2].mxu1 %v42_v45 }
 0x129   :  { %v509_v53 = vpop.f32.mrb[0].mxu1 }
 0x12a   :  { %v127_v54 = vpop.f32.mrb[1].mxu1 }
 0x12d   :  { %v514_v57 = vpop.f32.mrb[2].mxu1 }
 0x12e   :  { %v230_v58 = vadd.f32 %v514_v57, %v152_v55  ;;  %v220_v59 = vpop.f32.mrb[3].mxu1 }
 0x12f   :  { %v229_v60 = vadd.f32 %v220_v59, %v151_v56 }
 0x130   :  { %233 = vst.msk [vmem:[#allocation3 + $0x8] sm:$0xff] %vm145_vm0, %v230_v58 }
 0x131   :  { %232 = vst.msk [vmem:[#allocation3] sm:$0xff] %vm145_vm0, %v229_v60 }
 0x137   :  { %v238_v62 = vld [vmem:[#allocation3 + $0x8] sm:$0xff] }
 0x138   :  { %v237_v61 = vld [vmem:[#allocation3] sm:$0xff] }
 0x139   :  { %547 = vmatprep.mubr.msk.f32.mxu0 %vm145_vm0, %v237_v61 }
 0x13a   :  { %548 = vmatmul.mubr.msk.f32.vlgmr.msra.gmra.mrb[0].mxu0 %vm145_vm0, %v238_v62 }
 0x20d   :  { %v549_v63 = vpop.f32.mrb[0].mxu0 }
 0x20e   :  { %v388_v1 = vadd.f32 %v549_v63, %v509_v53  ;;  %v376_v2 = vpop.f32.mrb[1].mxu0 }
 0x20f   :  { %v387_v3 = vadd.f32 %v376_v2, %v127_v54 }
 0x210   :  { %v397_v4 = vadd.f32 %v435_v0, %v388_v1 }
 0x211   :  { %v396_v5 = vadd.f32 %v435_v0, %v387_v3 }
 0x212   :  { %399 = vst [vmem:[#allocation7 + $0x8] sm:$0xff] %v397_v4 }
 0x213   :  { %398 = vst [vmem:[#allocation7] sm:$0xff] %v396_v5 }
 0x214   :  { %670 = shalt.err (!%p667_p12)
}
 0x215   :  { %s671_s4 = scalar_lea.hbm %s905_s5, 256 }
 0x216   :  { %p672_p13 = scmp.ne.s32.totalorder %s905_s5, %s671_s4  ;;  %p675_p0 = scmp.lt.u32.totalorder %s671_s4, %s905_s5 }
 0x218   :  { %p677_p1 = pnand %p675_p0, %p672_p13 }
 0x21a   :  { %680 = shalt.err (!%p677_p1)
}
 0x21b   :  { %411 = dma.vmem_to_hbm [thread:$0]  %s406_s24, 256, %s905_s5, [#allocation6], %s686_s28, %s686_s28, %s687_s29  }
 0x21c   :  { %683 = dma.done.wait [#allocation6], 256  }
 0x21d   :  { %684 = vsyncadd [#allocation6], 4294967040 }
 0x21e   :  { %415 = vsyncpa [#allocation5], 1 }
 0x21f   :  { %416 = vsyncpa [#allocation6], 1 }

</bundles_post_ra>
